<compile_context>
chip_gen: v5e
topology: v5e:2x2
jax: 0.10.0
libtpu: 0.0.40
codegen_flags: <defaults>
</compile_context>

<pallas_src>
import functools

import jax
import jax.numpy as jnp
from jax.experimental import pallas as pl
from jax.experimental.pallas import tpu as pltpu


def _cdiv(a, b):
    return (a + b - 1) // b


def _round_up(a, m):
    return _cdiv(a, m) * m


def _sublane_mult(itemsize):
    # sublane packing factor: f32 -> 8, bf16 -> 16, int8/fp8 -> 32
    return max(8, 8 * (4 // max(1, itemsize)))


def _pick_block_budget():
    """Per-generation input-block budget (bytes)."""
    kind = ""
    try:
        kind = jax.devices()[0].device_kind.lower()
    except Exception:
        pass
    if "v6" in kind:
        return 14 << 20   # 128 MiB physical VMEM; scoped limit raised below
    if "v5" in kind:
        return 12 << 20   # 128 MiB physical VMEM
    return 8 << 20        # v7x (64 MiB / TC) and unknown chips: conservative


def _vmem_limit_bytes(footprint):
    # double-buffered footprint + headroom, clamped under v7x's 64 MiB VMEM
    return int(min(max(footprint + (8 << 20), 32 << 20), 48 << 20))


def _block_bytes(bt, tt, st, itemsize, sub):
    # In-VMEM bytes of one (bt, tt, st) block: T is sublane-padded to `sub`.
    return bt * _round_up(tt, sub) * st * itemsize


# ----------------------------- kernels -------------------------------------


def _time_pool_flat_kernel(x_ref, o_ref, *, t_total, s_pad):
    # x_ref: (Bt, T * S_pad); o_ref: (Bt, S_pad).
    # T-1 lane-aligned VALU adds (S_pad is a multiple of 128 => aligned slices).
    x = x_ref[...]
    acc = x[:, 0:s_pad].astype(jnp.float32)
    for t in range(1, t_total):
        acc = acc + x[:, t * s_pad:(t + 1) * s_pad].astype(jnp.float32)
    o_ref[...] = (acc * (1.0 / t_total)).astype(o_ref.dtype)


def _time_pool_acc_kernel(x_ref, o_ref, acc_ref, *, t_total, t_tile, mask_t):
    # x_ref: (Bt, Tt, St); o_ref / acc_ref: (Bt, St).  Grid axis 2 walks T.
    t = pl.program_id(2)

    @pl.when(t == 0)
    def _():
        acc_ref[...] = jnp.zeros_like(acc_ref)

    x = x_ref[...].astype(jnp.float32)
    if mask_t:
        # Last T block is ragged: zero the out-of-range rows before summing.
        row = t * t_tile + jax.lax.broadcasted_iota(jnp.int32, x.shape, 1)
        x = jnp.where(row < t_total, x, 0.0)
    acc_ref[...] += jnp.sum(x, axis=1)

    @pl.when(t == pl.num_programs(2) - 1)
    def _():
        o_ref[...] = (acc_ref[...] * (1.0 / t_total)).astype(o_ref.dtype)


# --------------------------- tile selection ---------------------------------


def _choose_tiles_2d(B, row_bytes, budget):
    Bt = B
    while _round_up(Bt, 8) * row_bytes > budget and Bt > 8:
        Bt = max(8, ((Bt // 2) // 8) * 8)
    if _round_up(Bt, 8) * row_bytes > budget:
        return None  # does not fit: caller falls back to the 3D path
    # Megacore (v7x): avoid a single-block grid when the block is big.
    if _cdiv(B, Bt) == 1 and B >= 16 and _round_up(Bt, 8) * row_bytes >= (2 << 20):
        Bt = max(8, _round_up(_cdiv(B, 2), 8))
    return Bt


def _choose_tiles_3d(B, T, S_pad, itemsize, budget, sub):
    Bt, Tt, St = B, T, S_pad
    while _block_bytes(Bt, Tt, St, itemsize, sub) > budget and Bt > 8:
        Bt = max(8, ((Bt // 2) // 8) * 8)
    while _block_bytes(Bt, Tt, St, itemsize, sub) > budget and St > 128:
        St = max(128, ((St // 2) // 128) * 128)
    while _block_bytes(Bt, Tt, St, itemsize, sub) > budget and Tt > sub:
        Tt = max(sub, ((Tt // 2) // sub) * sub)

    # Megacore (v7x has 2 TensorCores): if everything collapsed into a single
    # parallel block but the block is big, split one parallel axis in two.
    if (_cdiv(B, Bt) * _cdiv(S_pad, St) == 1
            and _block_bytes(Bt, Tt, St, itemsize, sub) >= (2 << 20)):
        if S_pad >= 256:
            St = max(128, _round_up(_cdiv(S_pad, 2), 128))
        elif B >= 16:
            Bt = max(8, _round_up(_cdiv(B, 2), 8))
    return Bt, Tt, St


# ------------------------------ wrapper -------------------------------------


def time_pool(x, *, max_block_bytes=None):
    """Mean over axis 1 of a (B, T, H, W) array (== torch `x.mean(1)`)."""
    B, T, H, W = x.shape
    S = H * W
    dtype = x.dtype
    itemsize = jnp.dtype(dtype).itemsize
    sub = _sublane_mult(itemsize)
    budget = max_block_bytes if max_block_bytes is not None else _pick_block_budget()

    # Lane-dense layout: flatten spatial dims and pad S to a multiple of 128
    # so all output stores are unmasked vst (largest single measured lever).
    S_pad = _round_up(S, 128)
    x2 = x.reshape(B, T, S)
    if S_pad != S:
        x2 = jnp.pad(x2, ((0, 0), (0, 0), (0, S_pad - S)))

    cost = pl.CostEstimate(
        flops=B * T * S_pad,
        transcendentals=0,
        bytes_accessed=(B * T * S_pad + B * S_pad) * itemsize,
    )

    # Small-T path: avoids sublane padding of T and cross-sublane reduces.
    flat_bt = None
    if T < sub:
        flat_bt = _choose_tiles_2d(B, T * S_pad * itemsize, budget)

    if flat_bt is not None:
        Bt = flat_bt
        xf = x2.reshape(B, T * S_pad)
        in_block = _round_up(Bt, 8) * T * S_pad * itemsize
        out_block = _round_up(Bt, 8) * S_pad * itemsize
        footprint = 2 * in_block + 2 * out_block
        kernel = functools.partial(_time_pool_flat_kernel, t_total=T, s_pad=S_pad)
        out2 = pl.pallas_call(
            kernel,
            out_shape=jax.ShapeDtypeStruct((B, S_pad), dtype),
            grid=(_cdiv(B, Bt),),
            in_specs=[pl.BlockSpec((Bt, T * S_pad), lambda b: (b, 0))],
            out_specs=pl.BlockSpec((Bt, S_pad), lambda b: (b, 0)),
            compiler_params=pltpu.CompilerParams(
                dimension_semantics=("parallel",),
                vmem_limit_bytes=_vmem_limit_bytes(footprint),
            ),
            cost_estimate=cost,
        )(xf)
    else:
        Bt, Tt, St = _choose_tiles_3d(B, T, S_pad, itemsize, budget, sub)
        nt = _cdiv(T, Tt)
        mask_t = (T % Tt) != 0
        in_block = _block_bytes(Bt, Tt, St, itemsize, sub)
        out_block = _round_up(Bt, 8) * St * itemsize
        acc_block = _round_up(Bt, 8) * St * 4
        footprint = 2 * in_block + 2 * out_block + acc_block
        kernel = functools.partial(
            _time_pool_acc_kernel, t_total=T, t_tile=Tt, mask_t=mask_t)
        out2 = pl.pallas_call(
            kernel,
            out_shape=jax.ShapeDtypeStruct((B, S_pad), dtype),
            grid=(_cdiv(B, Bt), _cdiv(S_pad, St), nt),
            in_specs=[pl.BlockSpec((Bt, Tt, St), lambda b, s, t: (b, t, s))],
            out_specs=pl.BlockSpec((Bt, St), lambda b, s, t: (b, s)),
            scratch_shapes=[pltpu.VMEM((Bt, St), jnp.float32)],
            compiler_params=pltpu.CompilerParams(
                dimension_semantics=("parallel", "parallel", "arbitrary"),
                vmem_limit_bytes=_vmem_limit_bytes(footprint),
            ),
            cost_estimate=cost,
        )(x2)

    if S_pad != S:
        out2 = out2[:, :S]
    return out2.reshape(B, H, W)


if __name__ == "__main__":
    key = jax.random.PRNGKey(0)

    # Primary shape consistent with the module: batch=2, time=4, spatial=16x16.
    x = jax.random.normal(key, (2, 4, 16, 16), dtype=jnp.float32)
    out = jax.block_until_ready(time_pool(x))
    ref = jnp.mean(x, axis=1)
    assert out.shape == ref.shape, (out.shape, ref.shape)
    assert jnp.allclose(out, ref, atol=1e-6, rtol=1e-6)

    # Extra coverage: S not a multiple of 128 (7x7) -> padded lane-dense path.
    k1, k2 = jax.random.split(key)
    x2 = jax.random.normal(k1, (2, 12, 7, 7), dtype=jnp.float32)
    out2 = jax.block_until_ready(time_pool(x2))
    assert jnp.allclose(out2, jnp.mean(x2, axis=1), atol=1e-5, rtol=1e-5)

    # Extra coverage: tiny block budget forces the T-tiled accumulator path
    # (ragged last T block + masking).
    x3 = jax.random.normal(k2, (3, 20, 8, 16), dtype=jnp.float32)
    out3 = jax.block_until_ready(time_pool(x3, max_block_bytes=16 * 1024))
    assert jnp.allclose(out3, jnp.mean(x3, axis=1), atol=1e-5, rtol=1e-5)

    print("KERNEL_OK")
</pallas_src>

<mosaic_0001>
module attributes {stable_mosaic.version = 11 : i64} {
  func.func @_time_pool_flat_kernel(%arg0: i32, %arg1: memref<2x1024xf32, #tpu.memory_space<vmem>>, %arg2: memref<2x256xf32, #tpu.memory_space<vmem>>) attributes {dimension_semantics = [#tpu.dimension_semantics<parallel>], iteration_bounds = array<i64: 1>, scalar_prefetch = 0 : i64, scratch_operands = 0 : i64, tpu.core_type = #tpu.core_type<tc>, window_params = [{transform_indices = @transform_0, window_bounds = array<i64: 2, 1024>}, {transform_indices = @transform_1, window_bounds = array<i64: 2, 256>}]} {
    %c0 = arith.constant 0 : index
    %c0_0 = arith.constant 0 : index
    %0 = vector.load %arg1[%c0, %c0_0] : memref<2x1024xf32, #tpu.memory_space<vmem>>, vector<2x1024xf32>
    %1 = vector.extract_strided_slice %0 {offsets = [0, 0], sizes = [2, 256], strides = [1, 1]} : vector<2x1024xf32> to vector<2x256xf32>
    %2 = vector.extract_strided_slice %0 {offsets = [0, 256], sizes = [2, 256], strides = [1, 1]} : vector<2x1024xf32> to vector<2x256xf32>
    %3 = arith.addf %1, %2 : vector<2x256xf32>
    %4 = vector.extract_strided_slice %0 {offsets = [0, 512], sizes = [2, 256], strides = [1, 1]} : vector<2x1024xf32> to vector<2x256xf32>
    %5 = arith.addf %3, %4 : vector<2x256xf32>
    %6 = vector.extract_strided_slice %0 {offsets = [0, 768], sizes = [2, 256], strides = [1, 1]} : vector<2x1024xf32> to vector<2x256xf32>
    %7 = arith.addf %5, %6 : vector<2x256xf32>
    %cst = arith.constant 2.500000e-01 : f32
    %8 = vector.broadcast %cst : f32 to vector<2x256xf32>
    %9 = arith.mulf %7, %8 : vector<2x256xf32>
    %c0_1 = arith.constant 0 : index
    %c0_2 = arith.constant 0 : index
    %10 = vector.load %arg2[%c0_1, %c0_2] : memref<2x256xf32, #tpu.memory_space<vmem>>, vector<2x256xf32>
    tpu.vector_store %arg2[%c0_1, %c0_2], %9 {strides = array<i32>} : memref<2x256xf32, #tpu.memory_space<vmem>>, vector<2x256xf32>,
    return
  }
  func.func @transform_0(%arg0: i32) -> (i32, i32) {
    %c0_i32 = arith.constant 0 : i32
    %c0_i32_0 = arith.constant 0 : i32
    return %arg0, %c0_i32 : i32, i32
  }
  func.func @transform_1(%arg0: i32) -> (i32, i32) {
    %c0_i32 = arith.constant 0 : i32
    %c0_i32_0 = arith.constant 0 : i32
    return %arg0, %c0_i32 : i32, i32
  }
}

</mosaic_0001>

<bundles_post_ra>
// kernel: tpu_custom_call.1
= control target key start
LH: loop header
LB: loop body
LE: loop exit
PB: predicated region body
PF: predicated region fallthrough
CT: control target
= control target key end

     0   :  { %6 = vsyncpa [#allocation3], 0  ;;  %s125_s0 = inlined_call_operand.hbm [shape: f32[2,1024], index: 0, kind: input, shape index: {}]   ;;  %s126_s1 = inlined_call_operand.hbm [shape: f32[2,256], index: 1, kind: output, shape index: {}]  }
   0x1   :  { %7 = vsyncpa [#allocation4], 0  ;;  %s13_s8 = sshll.u32 %s125_s0, 4  ;;  %s107_s9 = smov [#allocation2]   ;;  %s14_s8 = int_to_ptr.hbm [resolvable:$true] %s13_s8 }
   0x2   :  { %s15_s10 = sshll.u32 %s107_s9, 4  ;;  %s16_s10 = int_to_ptr.vmem [resolvable:$true] %s15_s10 }
   0x3   :  { %18 = dma.hbm_to_vmem [thread:$0]  %s14_s8, 256, %s16_s10, [#allocation3]  }
   0x4   :  { %103 = dma.done.wait [#allocation3], 256  }
   0x5   :  { %104 = vsyncadd [#allocation3], 4294967040  ;;  %v23_v0 = vld [vmem:[#allocation2] sm:$0xff]  ;;  %v24_v1 = vld [vmem:[#allocation2 + $0x8] sm:$0xff]  ;;  %s108_s11 = smov [#allocation5]   ;;  %s43_s15 = sshll.u32 %s126_s1, 4  ;;  %s44_s15 = int_to_ptr.hbm [resolvable:$true] %s43_s15 }
   0x6   :  { %v26_v2 = vrot.slane %v23_v0, 4  ;;  %v31_v4 = vrot.slane %v24_v1, 4  ;;  %s41_s12 = sshll.u32 %s108_s11, 4  ;;  %s42_s12 = int_to_ptr.vmem [resolvable:$true] %s41_s12 }
   0x8   :  { %v28_v3 = vadd.f32 %v26_v2, %v23_v0 }
   0xa   :  { %v29_v5 = vadd.f32 %v28_v3, %v24_v1 }
   0xc   :  { %v33_v6 = vadd.f32 %v31_v4, %v29_v5 }
   0xe   :  { %v34_v7 = vmul.f32 0.25, %v33_v6 }
  0x10   :  { %35 = vst [vmem:[#allocation5] sm:$0xf] %v34_v7 }
  0x11   :  { %46 = dma.vmem_to_hbm [thread:$0]  %s42_s12, 64, %s44_s15, [#allocation4]  }
  0x12   :  { %105 = dma.done.wait [#allocation4], 64  }
  0x13   :  { %106 = vsyncadd [#allocation4], 4294967232 }
  0x14   :  { %51 = vsyncpa [#allocation3], 1 }
  0x15   :  { %52 = vsyncpa [#allocation4], 1 }

</bundles_post_ra>
